<compile_context>
chip_gen: v7x
topology: tpu7x:2x2x1
jax: 0.10.0
libtpu: 0.0.40
codegen_flags: <defaults>
</compile_context>

<pallas_src>
import jax
import jax.numpy as jnp
from jax.experimental import pallas as pl
from jax.experimental.pallas import tpu as pltpu


def _round_up(x, m):
    return ((x + m - 1) // m) * m


def _cdiv(a, b):
    return (a + b - 1) // b


def _additive_attention_kernel(q_ref, kv_ref, wq_ref, wk_ref, params_ref, out_ref):
    """One batch tile.

    q_ref      : (TB, Qd)        f32
    kv_ref     : (TB, N, Kd)     f32
    wq_ref     : (Qd, A_pad)     f32  attn_w_1_q weight (transposed, zero-padded)
    wk_ref     : (Kd, A_pad)     f32  attn_w_1_k weight (transposed, zero-padded)
    params_ref : (4, A_pad)      f32  rows: [bq, bk, w2, b2-at-(3,0)]
    out_ref    : (TB, OUT_pad)   f32  lanes [0:Kd] = output, [Kd:Kd+N] = attn
    """
    TB = q_ref.shape[0]
    N, Kd = kv_ref.shape[1], kv_ref.shape[2]
    A = wq_ref.shape[1]
    OUT = out_ref.shape[1]

    q = q_ref[...]                                   # (TB, Qd)
    kv = kv_ref[...]                                 # (TB, N, Kd)
    bq = params_ref[0:1, :]                          # (1, A)
    bk = params_ref[1:2, :]                          # (1, A)
    w2 = params_ref[2:3, :]                          # (1, A)
    b2 = params_ref[3:4, 0:1]                        # (1, 1)

    # queries = attn_w_1_q(query) -> (TB, A).  f32 for exactness; bf16 inputs
    # (with preferred_element_type=f32) are the v6e/v7x lever when MXU-bound.
    queries = jnp.dot(q, wq_ref[...], preferred_element_type=jnp.float32) + bq

    # keys = attn_w_1_k(key_value) -> (TB, N, A).  N % 8 == 0 keeps these
    # sublane-only reshapes tile-aligned (no relayout copy).
    kv2d = kv.reshape(TB * N, Kd)
    keys = jnp.dot(kv2d, wk_ref[...], preferred_element_type=jnp.float32) + bk
    keys = keys.reshape(TB, N, A)

    # scores = attn_w_2(tanh(queries.unsqueeze(1) + keys)).squeeze(2) -> (TB, N)
    # tanh runs on the EUP; with A padded to 128 every vreg lane is live
    # (padded lanes carry exact zeros from the zero-padded weights/biases).
    h = jnp.tanh(queries[:, None, :] + keys)              # (TB, N, A)
    logits = jnp.sum(h * w2[None, :, :], axis=-1) + b2    # (TB, N)

    # softmax over n_kv (dim=1); reciprocal reused for the weighted-sum path.
    m = jnp.max(logits, axis=1, keepdims=True)
    e = jnp.exp(logits - m)                          # (TB, N)
    denom = jnp.sum(e, axis=1, keepdims=True)        # (TB, 1)
    # approx=True would be EUP-cheaper but costs ~1e-3 accuracy on the returned
    # attention weights; keep the exact form to hold 1e-4 tolerances.
    inv = pl.reciprocal(denom, approx=False)
    attn = e * inv                                   # (TB, N)

    # output = bmm(attn.unsqueeze(1), key_value).squeeze(1) -> (TB, Kd).
    # N is tiny (8): VPU multiply + sublane reduce beats per-batch M=1 MXU matmuls.
    weighted = jnp.sum(e[:, :, None] * kv, axis=1) * inv   # (TB, Kd)

    # Single full-width store: pack [weighted | attn | zeros] in vregs and do
    # one dense (TB, OUT_pad) write.  Trailing lanes are zeros; the wrapper
    # slices only [:B, :Kd+N], so they never escape.
    packed = jnp.concatenate(
        [weighted, attn, jnp.zeros((TB, OUT - (Kd + N)), jnp.float32)], axis=-1)
    out_ref[...] = packed


def additive_attention(query, key_value, wq, bq, wk, bk, w2, b2, *, block_b=None):
    """Forward pass of AdditiveAttention.  Returns (output (B, Kd), attn (B, N))."""
    query = jnp.asarray(query, jnp.float32)
    key_value = jnp.asarray(key_value, jnp.float32)
    wq = jnp.asarray(wq, jnp.float32)
    bq = jnp.asarray(bq, jnp.float32)
    wk = jnp.asarray(wk, jnp.float32)
    bk = jnp.asarray(bk, jnp.float32)
    w2 = jnp.asarray(w2, jnp.float32)
    b2 = jnp.asarray(b2, jnp.float32)

    B, Qd = query.shape
    _, N, Kd = key_value.shape
    A = wq.shape[1]

    # ---- wrapper-side (free) layout plumbing -------------------------------
    # Zero-pad the attention dim to a full 128-lane vreg (numerically exact).
    A_pad = _round_up(A, 128)
    wq_p = jnp.zeros((Qd, A_pad), jnp.float32).at[:, :A].set(wq)
    wk_p = jnp.zeros((Kd, A_pad), jnp.float32).at[:, :A].set(wk)
    # Pack the four tiny parameter tensors into a single VMEM tile / DMA.
    # NOTE: assumes torch.nn.Linear conventions: bq/bk are (1, A), b2 is (1, 1).
    params = jnp.zeros((4, A_pad), jnp.float32)
    params = params.at[0, :A].set(bq.reshape(-1))
    params = params.at[1, :A].set(bk.reshape(-1))
    params = params.at[2, :A].set(w2.reshape(-1))
    params = params.at[3, 0].set(b2[0, 0])

    # ---- batch tile / grid policy ------------------------------------------
    # Per-row VMEM footprint is ~20 KiB (lane-padded kv block double-buffered
    # plus the (TB, N, A_pad) f32 keys/h intermediates), so cap TB at 512
    # (~12-16 MiB live) to stay well under v7x's 64 MiB VMEM.  On v5e/v6e
    # (128 MiB) raise TB_MAX toward 1024-2048 for very large B if per-step
    # overhead shows up in profiles.
    TB_MAX = 512
    if block_b is None:
        # Always at least 2 balanced grid steps: both v7x TensorCores get work
        # on the "parallel" axis and the input/output pipeline double-buffers.
        n_tiles = max(2, _cdiv(B, TB_MAX))
        TB = _round_up(_cdiv(B, n_tiles), 8)
    else:
        TB = _round_up(block_b, 8)
        n_tiles = max(1, _cdiv(B, TB))
    B_pad = n_tiles * TB
    if B_pad != B:
        query = jnp.pad(query, ((0, B_pad - B), (0, 0)))
        key_value = jnp.pad(key_value, ((0, B_pad - B), (0, 0), (0, 0)))

    OUT_pad = _round_up(Kd + N, 128)
    grid = (B_pad // TB,)

    packed = pl.pallas_call(
        _additive_attention_kernel,
        out_shape=jax.ShapeDtypeStruct((B_pad, OUT_pad), jnp.float32),
        grid=grid,
        in_specs=[
            pl.BlockSpec((TB, Qd), lambda i: (i, 0)),          # query tile
            pl.BlockSpec((TB, N, Kd), lambda i: (i, 0, 0)),    # key_value tile
            pl.BlockSpec((Qd, A_pad), lambda i: (0, 0)),       # wq (resident)
            pl.BlockSpec((Kd, A_pad), lambda i: (0, 0)),       # wk (resident)
            pl.BlockSpec((4, A_pad), lambda i: (0, 0)),        # packed biases/w2/b2
        ],
        out_specs=pl.BlockSpec((TB, OUT_pad), lambda i: (i, 0)),
        compiler_params=pltpu.CompilerParams(
            dimension_semantics=("parallel",),
            # Explicit budget: ~20 KiB/row * TB plus double-buffering fits
            # easily; 64 MiB cap leaves headroom on v5e/v6e and matches v7x.
            vmem_limit_bytes=64 * 1024 * 1024,
        ),
    )(query, key_value, wq_p, wk_p, params)

    output = packed[:B, :Kd]
    attn = packed[:B, Kd:Kd + N]
    return output, attn


def _reference(query, key_value, wq, bq, wk, bk, w2, b2):
    queries = query @ wq + bq[0]                      # (B, A)
    keys = key_value @ wk + bk[0]                     # (B, N, A)
    h = jnp.tanh(queries[:, None, :] + keys)          # (B, N, A)
    logits = jnp.sum(h * w2[0][None, None, :], axis=-1) + b2[0, 0]
    attn = jax.nn.softmax(logits, axis=1)             # (B, N)
    output = jnp.einsum("bn,bnk->bk", attn, key_value)
    return output, attn


if __name__ == "__main__":
    # Small shapes consistent with the module's forward signature.
    B, q_dim, kv_dim, attn_dim, n_kv = 2, 32, 16, 32, 8

    key = jax.random.PRNGKey(0)
    k_q, k_kv, k_wq, k_bq, k_wk, k_bk, k_w2, k_b2 = jax.random.split(key, 8)

    query = jax.random.normal(k_q, (B, q_dim), dtype=jnp.float32)
    key_value = jax.random.normal(k_kv, (B, n_kv, kv_dim), dtype=jnp.float32)

    # Synthetic parameters (torch.nn.Linear shapes, transposed to (in, out)).
    wq = jax.random.normal(k_wq, (q_dim, attn_dim), dtype=jnp.float32) * 0.1
    bq = jax.random.normal(k_bq, (1, attn_dim), dtype=jnp.float32) * 0.1
    wk = jax.random.normal(k_wk, (kv_dim, attn_dim), dtype=jnp.float32) * 0.1
    bk = jax.random.normal(k_bk, (1, attn_dim), dtype=jnp.float32) * 0.1
    w2 = jax.random.normal(k_w2, (1, attn_dim), dtype=jnp.float32) * 0.1
    b2 = jax.random.normal(k_b2, (1, 1), dtype=jnp.float32) * 0.1

    out, attn = additive_attention(query, key_value, wq, bq, wk, bk, w2, b2)
    jax.block_until_ready((out, attn))

    ref_out, ref_attn = _reference(query, key_value, wq, bq, wk, bk, w2, b2)
    assert out.shape == (B, kv_dim) and attn.shape == (B, n_kv)
    assert jnp.allclose(out, ref_out, atol=1e-4, rtol=1e-4)
    assert jnp.allclose(attn, ref_attn, atol=1e-4, rtol=1e-4)

    print("KERNEL_OK")
</pallas_src>

<mosaic_0001>
module attributes {stable_mosaic.version = 11 : i64} {
  func.func @_additive_attention_kernel(%arg0: i32, %arg1: memref<8x32xf32, #tpu.memory_space<vmem>>, %arg2: memref<8x8x16xf32, #tpu.memory_space<vmem>>, %arg3: memref<32x128xf32, #tpu.memory_space<vmem>>, %arg4: memref<16x128xf32, #tpu.memory_space<vmem>>, %arg5: memref<4x128xf32, #tpu.memory_space<vmem>>, %arg6: memref<8x128xf32, #tpu.memory_space<vmem>>) attributes {dimension_semantics = [#tpu.dimension_semantics<parallel>], iteration_bounds = array<i64: 2>, scalar_prefetch = 0 : i64, scratch_operands = 0 : i64, tpu.core_type = #tpu.core_type<tc>, window_params = [{transform_indices = @transform_0, window_bounds = array<i64: 8, 32>}, {transform_indices = @transform_1, window_bounds = array<i64: 8, 8, 16>}, {pipeline_mode = #tpu.pipeline_mode<synchronous>, transform_indices = @transform_2, window_bounds = array<i64: 32, 128>}, {pipeline_mode = #tpu.pipeline_mode<synchronous>, transform_indices = @transform_3, window_bounds = array<i64: 16, 128>}, {pipeline_mode = #tpu.pipeline_mode<synchronous>, transform_indices = @transform_4, window_bounds = array<i64: 4, 128>}, {transform_indices = @transform_5, window_bounds = array<i64: 8, 128>}]} {
    %c0 = arith.constant 0 : index
    %c0_0 = arith.constant 0 : index
    %0 = vector.load %arg1[%c0, %c0_0] : memref<8x32xf32, #tpu.memory_space<vmem>>, vector<8x32xf32>
    %c0_1 = arith.constant 0 : index
    %c0_2 = arith.constant 0 : index
    %c0_3 = arith.constant 0 : index
    %1 = vector.load %arg2[%c0_1, %c0_2, %c0_3] : memref<8x8x16xf32, #tpu.memory_space<vmem>>, vector<8x8x16xf32>
    %c0_4 = arith.constant 0 : index
    %c0_5 = arith.constant 0 : index
    %2 = vector.load %arg5[%c0_4, %c0_5] : memref<4x128xf32, #tpu.memory_space<vmem>>, vector<1x128xf32>
    %c1 = arith.constant 1 : index
    %c0_6 = arith.constant 0 : index
    %3 = vector.load %arg5[%c1, %c0_6] : memref<4x128xf32, #tpu.memory_space<vmem>>, vector<1x128xf32>
    %c2 = arith.constant 2 : index
    %c0_7 = arith.constant 0 : index
    %4 = vector.load %arg5[%c2, %c0_7] : memref<4x128xf32, #tpu.memory_space<vmem>>, vector<1x128xf32>
    %c3 = arith.constant 3 : index
    %c0_8 = arith.constant 0 : index
    %5 = vector.load %arg5[%c3, %c0_8] : memref<4x128xf32, #tpu.memory_space<vmem>>, vector<1x1xf32>
    %c0_9 = arith.constant 0 : index
    %c0_10 = arith.constant 0 : index
    %6 = vector.load %arg3[%c0_9, %c0_10] : memref<32x128xf32, #tpu.memory_space<vmem>>, vector<32x128xf32>
    %cst = arith.constant dense<0.000000e+00> : vector<8x128xf32>
    %7 = tpu.matmul %0, %6, %cst {dimension_numbers = #tpu.dot_dimension_numbers<[1], [0], [0], [1], [0, 0, 1, 1], [], []>} : vector<8x32xf32>, vector<32x128xf32>, vector<8x128xf32> -> vector<8x128xf32>
    %8 = vector.broadcast %2 : vector<1x128xf32> to vector<8x128xf32>
    %9 = arith.addf %7, %8 : vector<8x128xf32>
    %10 = vector.shape_cast %1 : vector<8x8x16xf32> to vector<64x16xf32>
    %c0_11 = arith.constant 0 : index
    %c0_12 = arith.constant 0 : index
    %11 = vector.load %arg4[%c0_11, %c0_12] : memref<16x128xf32, #tpu.memory_space<vmem>>, vector<16x128xf32>
    %cst_13 = arith.constant dense<0.000000e+00> : vector<64x128xf32>
    %12 = tpu.matmul %10, %11, %cst_13 {dimension_numbers = #tpu.dot_dimension_numbers<[1], [0], [0], [1], [0, 0, 1, 1], [], []>} : vector<64x16xf32>, vector<16x128xf32>, vector<64x128xf32> -> vector<64x128xf32>
    %13 = vector.broadcast %3 : vector<1x128xf32> to vector<64x128xf32>
    %14 = arith.addf %12, %13 : vector<64x128xf32>
    %15 = vector.shape_cast %14 : vector<64x128xf32> to vector<8x8x128xf32>
    %16 = vector.shape_cast %9 : vector<8x128xf32> to vector<8x1x128xf32>
    %17 = vector.broadcast %16 : vector<8x1x128xf32> to vector<8x8x128xf32>
    %18 = arith.addf %17, %15 : vector<8x8x128xf32>
    %19 = math.tanh %18 : vector<8x8x128xf32>
    %20 = vector.shape_cast %4 : vector<1x128xf32> to vector<1x1x128xf32>
    %21 = vector.broadcast %20 : vector<1x1x128xf32> to vector<8x8x128xf32>
    %22 = arith.mulf %19, %21 : vector<8x8x128xf32>
    %cst_14 = arith.constant dense<0.000000e+00> : vector<8x8xf32>
    %23 = vector.multi_reduction <add>, %22, %cst_14 [2] : vector<8x8x128xf32> to vector<8x8xf32>
    %24 = vector.broadcast %5 : vector<1x1xf32> to vector<8x8xf32>
    %25 = arith.addf %23, %24 : vector<8x8xf32>
    %cst_15 = arith.constant dense<0xFF800000> : vector<8xf32>
    %26 = vector.multi_reduction <maximumf>, %25, %cst_15 [1] : vector<8x8xf32> to vector<8xf32>
    %27 = vector.shape_cast %26 : vector<8xf32> to vector<8x1xf32>
    %28 = vector.broadcast %27 : vector<8x1xf32> to vector<8x8xf32>
    %29 = arith.subf %25, %28 : vector<8x8xf32>
    %30 = math.exp %29 : vector<8x8xf32>
    %cst_16 = arith.constant dense<0.000000e+00> : vector<8xf32>
    %31 = vector.multi_reduction <add>, %30, %cst_16 [1] : vector<8x8xf32> to vector<8xf32>
    %32 = vector.shape_cast %31 : vector<8xf32> to vector<8x1xf32>
    %33 = tpu.reciprocal %32 : vector<8x1xf32> -> vector<8x1xf32>
    %34 = vector.broadcast %33 : vector<8x1xf32> to vector<8x8xf32>
    %35 = arith.mulf %30, %34 : vector<8x8xf32>
    %36 = vector.shape_cast %30 : vector<8x8xf32> to vector<8x8x1xf32>
    %37 = vector.broadcast %36 : vector<8x8x1xf32> to vector<8x8x16xf32>
    %38 = arith.mulf %37, %1 : vector<8x8x16xf32>
    %cst_17 = arith.constant dense<0.000000e+00> : vector<8x16xf32>
    %39 = vector.multi_reduction <add>, %38, %cst_17 [1] : vector<8x8x16xf32> to vector<8x16xf32>
    %40 = vector.broadcast %33 : vector<8x1xf32> to vector<8x16xf32>
    %41 = arith.mulf %39, %40 : vector<8x16xf32>
    %cst_18 = arith.constant 0.000000e+00 : f32
    %42 = vector.broadcast %cst_18 : f32 to vector<8x104xf32>
    %43 = tpu.concatenate %41, %35, %42 in 1 : vector<8x16xf32>, vector<8x8xf32>, vector<8x104xf32> -> vector<8x128xf32>
    %c0_19 = arith.constant 0 : index
    %c0_20 = arith.constant 0 : index
    %44 = vector.load %arg6[%c0_19, %c0_20] : memref<8x128xf32, #tpu.memory_space<vmem>>, vector<8x128xf32>
    tpu.vector_store %arg6[%c0_19, %c0_20], %43 {strides = array<i32>} : memref<8x128xf32, #tpu.memory_space<vmem>>, vector<8x128xf32>,
    return
  }
  func.func @transform_0(%arg0: i32) -> (i32, i32) {
    %c0_i32 = arith.constant 0 : i32
    %c0_i32_0 = arith.constant 0 : i32
    return %arg0, %c0_i32 : i32, i32
  }
  func.func @transform_1(%arg0: i32) -> (i32, i32, i32) {
    %c0_i32 = arith.constant 0 : i32
    %c0_i32_0 = arith.constant 0 : i32
    %c0_i32_1 = arith.constant 0 : i32
    return %arg0, %c0_i32, %c0_i32_0 : i32, i32, i32
  }
  func.func @transform_2(%arg0: i32) -> (i32, i32) {
    %c0_i32 = arith.constant 0 : i32
    %c0_i32_0 = arith.constant 0 : i32
    %c0_i32_1 = arith.constant 0 : i32
    return %c0_i32, %c0_i32_0 : i32, i32
  }
  func.func @transform_3(%arg0: i32) -> (i32, i32) {
    %c0_i32 = arith.constant 0 : i32
    %c0_i32_0 = arith.constant 0 : i32
    %c0_i32_1 = arith.constant 0 : i32
    return %c0_i32, %c0_i32_0 : i32, i32
  }
  func.func @transform_4(%arg0: i32) -> (i32, i32) {
    %c0_i32 = arith.constant 0 : i32
    %c0_i32_0 = arith.constant 0 : i32
    %c0_i32_1 = arith.constant 0 : i32
    return %c0_i32, %c0_i32_0 : i32, i32
  }
  func.func @transform_5(%arg0: i32) -> (i32, i32) {
    %c0_i32 = arith.constant 0 : i32
    %c0_i32_0 = arith.constant 0 : i32
    return %arg0, %c0_i32 : i32, i32
  }
}

</mosaic_0001>

<bundles_post_ra>
// kernel: tpu_custom_call.1
= control target key start
LH: loop header
LB: loop body
LE: loop exit
PB: predicated region body
PF: predicated region fallthrough
CT: control target
= control target key end

     0   :  { %s2279_s0 = inlined_call_operand.hbm [shape: f32[16,32], index: 0, kind: input, shape index: {}]   ;;  %s2280_s1 = inlined_call_operand.hbm [shape: f32[16,8,16], index: 1, kind: input, shape index: {}]   ;;  %s2281_s2 = inlined_call_operand.hbm [shape: f32[32,128], index: 2, kind: input, shape index: {}]   ;;  %s2282_s3 = inlined_call_operand.hbm [shape: f32[16,128], index: 3, kind: input, shape index: {}]   ;;  %s2283_s4 = inlined_call_operand.hbm [shape: f32[4,128], index: 4, kind: input, shape index: {}]   ;;  %s2284_s5 = inlined_call_operand.hbm [shape: f32[16,128], index: 5, kind: output, shape index: {}]  }
   0x1   :  { %2290 = sst [smem:[#allocation17_spill]] %s2279_s0 }
   0x2   :  { %10 = vsyncpa [#allocation3], 0 }
   0x3   :  { %12 = vsyncpa [#allocation3 + $0x1], 0 }
   0x4   :  { %13 = vsyncpa [#allocation6], 0 }
   0x5   :  { %15 = vsyncpa [#allocation6 + $0x1], 0 }
   0x6   :  { %16 = vsyncpa [#allocation9], 0 }
   0x7   :  { %17 = vsyncpa [#allocation4], 0 }
   0x8   :  { %19 = vsyncpa [#allocation4 + $0x1], 0  ;;  %s1763_s18 = smov 0   ;;  %s1765_s19 = smov 0  }
   0x9   :  { %s1767_s20 = smov 0   ;;  %s1769_s21 = smov 0  }
   0xa LB: > { %s1784_s22 = sadd.s32 4294967295, %s1718_s21   ;;  %s1280_s23 = sadd.s32 4294967294, %s1718_s21   ;;  %s1718_s21 = sphi %s1769_s21, %s2313_s21   ;;  %s1714_s20 = sphi %s1767_s20, %s2312_s20   ;;  %s1710_s19 = sphi %s1765_s19, %s2311_s19   ;;  %s1706_s18 = sphi %s1763_s18, %s2310_s18  }
   0xb   : > { %p45_p0 = scmp.ne.s32.totalorder %s1710_s19, %s1706_s18  ;;  %p2285_p1 = scmp.eq.s32.totalorder %s1784_s22, 0 }
   0xc   : > { %p164_p3 = scmp.eq.s32.totalorder %s1280_s23, 1  ;;  %p1281_p5 = scmp.ge.s32.totalorder %s1718_s21, 1 }
   0xd   : > { %p1793_p4 = por %p2285_p1, %p45_p0  ;;  %p171_p7 = scmp.lt.s32.totalorder %s1718_s21, 3 }
   0xe   : > { %p1798_p6 = por %p164_p3, %p45_p0  ;;  %s1720_s27 = smov [#allocation7]  }
   0xf   : > { %s2291_s24 = scalar_select %p1793_p4, 1, 0 }
  0x10   : > { %s2292_s25 = scalar_select %p1798_p6, 1, 0 }
  0x11   : > { %p1803_p8 = pnand %p1281_p5, %p171_p7  ;;  %s183_s28 = sshll.u32 %s1720_s27, 4  ;;  %s1807_s28 = int_to_ptr.vmem [resolvable:$true] %s183_s28 }
  0x12   : > { %s1721_s30 = smov [#allocation8]   ;;  %s1722_s7 = smov [#allocation10]  }
  0x13   : > { %s2293_s26 = scalar_select %p1803_p8, 1, 0 }
  0x14   : > { %p1389_p9 = pneg %p1803_p8  ;;  %s196_s6 = sshll.u32 %s1721_s30, 4  ;;  %s1818_s6 = int_to_ptr.vmem [resolvable:$true] %s196_s6 }
  0x15   : > { %s1820_s8 = sshll.u32 %s1722_s7, 4  ;;  %s1496_s11 = scalar_lea.hbm %s2281_s2, 512  ;;  %s211_s8 = int_to_ptr.vmem [resolvable:$true] %s1820_s8 }
  0x16   : > { %p1814_p11 = pnand %p1389_p9, %p2285_p1  ;;  %p1497_p12 = scmp.ne.s32.totalorder %s2281_s2, %s1496_s11 }
  0x17   : > { %p1503_p5 = scmp.lt.u32.totalorder %s1496_s11, %s2281_s2 }
  0x18   : > { %p1830_p13 = pneg %p1814_p11 }
  0x1a   : > { %p1499_p0 = pnand %p1830_p13, %p1497_p12 }
  0x1c   : > { %p1500_p3 = pneg %p1499_p0 }
  0x1e   : > { %p1505_p7 = pnand %p1503_p5, %p1500_p3 }
  0x20   : > { %1508 = shalt.err (!%p1505_p7)
}
  0x21   : > { %s1509_s17 = scalar_lea.vmem %s1807_s28, 512  ;;  %p1517_p2 = scmp.lt.s32.totalorder %s1807_s28, %s1807_s28 }
  0x22   : > { %p1510_p9 = scmp.ne.s32.totalorder %s1807_s28, %s1509_s17  ;;  %p1518_p6 = scmp.lt.s32.totalorder %s1509_s17, %s1509_s17 }
  0x24   : > { %p1512_p10 = pnand %p1510_p9, %p1830_p13  ;;  %p1519_p12 = por %p1518_p6, %p1517_p2 }
  0x26   : > { %p1513_p1 = pneg %p1512_p10 }
  0x28   : > { %p1520_p0 = pnand %p1519_p12, %p1513_p1 }
  0x2a   : > { %1523 = shalt.err (!%p1520_p0)
}
  0x2b   : > { %s2288_s23 = smov 128   ;;  %s2289_s27 = smov 8  }
  0x2c   : > { %1392 = dma.hbm_to_vmem [thread:$0]  (!%p1814_p11), %s2281_s2, 512, %s1807_s28, [#allocation6], %s2288_s23, %s2288_s23, %s2289_s27  }
  0x2d   : > { %s1524_s11 = scalar_lea.hbm %s2282_s3, 256 }
  0x2e   : > { %p1525_p1 = scmp.ne.s32.totalorder %s2282_s3, %s1524_s11  ;;  %p1531_p10 = scmp.lt.u32.totalorder %s1524_s11, %s2282_s3 }
  0x30   : > { %p1527_p2 = pnand %p1525_p1, %p1830_p13 }
  0x32   : > { %p1528_p6 = pneg %p1527_p2 }
  0x34   : > { %p1533_p3 = pnand %p1531_p10, %p1528_p6 }
  0x36   : > { %1536 = shalt.err (!%p1533_p3)
}
  0x37   : > { %s1537_s28 = scalar_lea.vmem %s1818_s6, 256  ;;  %p1545_p12 = scmp.lt.s32.totalorder %s1818_s6, %s1818_s6 }
  0x38   : > { %p1538_p5 = scmp.ne.s32.totalorder %s1818_s6, %s1537_s28  ;;  %p1546_p0 = scmp.lt.s32.totalorder %s1537_s28, %s1537_s28 }
  0x3a   : > { %p1540_p7 = pnand %p1538_p5, %p1830_p13  ;;  %p1547_p1 = por %p1546_p0, %p1545_p12 }
  0x3c   : > { %p1541_p9 = pneg %p1540_p7 }
  0x3e   : > { %p1548_p2 = pnand %p1547_p1, %p1541_p9 }
  0x40   : > { %1551 = shalt.err (!%p1548_p2)
}
  0x41   : > { %1395 = dma.hbm_to_vmem [thread:$0]  (!%p1814_p11), %s2282_s3, 256, %s1818_s6, [#allocation9], %s2288_s23, %s2288_s23, %s2289_s27  }
  0x42   : > { %s1552_s10 = scalar_lea.hbm %s2283_s4, 64 }
  0x43   : > { %p1553_p6 = scmp.ne.s32.totalorder %s2283_s4, %s1552_s10  ;;  %p1559_p5 = scmp.lt.u32.totalorder %s1552_s10, %s2283_s4 }
  0x45   : > { %p1555_p10 = pnand %p1553_p6, %p1830_p13 }
  0x47   : > { %p1556_p3 = pneg %p1555_p10 }
  0x49   : > { %p1561_p7 = pnand %p1559_p5, %p1556_p3 }
  0x4b   : > { %1564 = shalt.err (!%p1561_p7)
}
  0x4c   : > { %s1565_s16 = scalar_lea.vmem %s211_s8, 64  ;;  %p1573_p1 = scmp.lt.s32.totalorder %s211_s8, %s211_s8 }
  0x4d   : > { %p1566_p9 = scmp.ne.s32.totalorder %s211_s8, %s1565_s16  ;;  %p1574_p2 = scmp.lt.s32.totalorder %s1565_s16, %s1565_s16 }
  0x4f   : > { %p1568_p12 = pnand %p1566_p9, %p1830_p13  ;;  %p1575_p4 = por %p1574_p2, %p1573_p1 }
  0x51   : > { %p1569_p0 = pneg %p1568_p12 }
  0x53   : > { %p1576_p8 = pnand %p1575_p4, %p1569_p0 }
  0x55   : > { %1579 = shalt.err (!%p1576_p8)
}
  0x56   : > { %1398 = dma.hbm_to_vmem [thread:$0]  (!%p1814_p11), %s2283_s4, 64, %s211_s8, [#allocation9]  }
  0x57   : > { %s1900_s14 = sadd.s32 1, %s1718_s21   ;;  %s32_s29 = sadd.s32 1, %s1714_s20 }
  0x58   : > { %s29_s17 = ssub.s32 %s1718_s21, %s1900_s14  ;;  %p39_p8 = scmp.ne.s32.totalorder %s1714_s20, %s1710_s19 }
  0x59   : > { %p30_p4 = scmp.eq.s32.totalorder %s29_s17, 0  ;;  %p40_p13 = scmp.eq.s32.totalorder %s1718_s21, 0 }
  0x5a   : > { %p1413_p6 = scmp.lt.s32.totalorder %s1718_s21, 2  ;;  %p2296_p3 = scmp.eq.s32.totalorder %s1784_s22, 1 }
  0x5b   : > { %s1910_s30 = scalar_select %p30_p4, %s1714_s20, %s32_s29  }
  0x5c   : > { %p41_p10 = por %p40_p13, %p39_p8  ;;  %p1914_p5 = por %p2296_p3, %p39_p8 }
  0x5d   : > { %s1919_s9 = sand.u32 1, %s1714_s20   ;;  %s1287_s8 = sshll.u32 %s1718_s21, 7 }
  0x5e   : > { %s1286_s10 = sshll.u32 %s1919_s9, 3  ;;  %s2298_s0 = sld [smem:[#allocation17_spill]] }
  0x5f   : > { %s225_s15 = scalar_lea.vmem [#allocation2], %s1286_s10  ;;  %p1928_p11 = pnand %p1413_p6, %p41_p10 }
  0x60   : > { %s232_s16 = sshll.u32 %s225_s15, 4  ;;  %s1288_s28 = sshll.u32 %s1919_s9, 6  ;;  %s1932_s16 = int_to_ptr.vmem [resolvable:$true] %s232_s16 }
  0x61   : > { %s222_s17 = scalar_lea.sflag [#allocation3], %s1919_s9  ;;  %p1582_p9 = pneg %p1928_p11 }
  0x64   : > { %s1926_s13 = scalar_lea.hbm %s2298_s0, %s1287_s8  ;;  %s1585_s11 = scalar_lea.hbm %s2298_s0, 256 }
  0x65   : > { %s1580_s29 = scalar_lea.hbm %s1926_s13, 128  ;;  %p1586_p1 = scmp.lt.u32.totalorder %s1926_s13, %s2298_s0 }
  0x66   : > { %p1581_p7 = scmp.ne.s32.totalorder %s1926_s13, %s1580_s29  ;;  %p1587_p2 = scmp.lt.u32.totalorder %s1585_s11, %s1580_s29 }
  0x67   : > { %p1589_p8 = scmp.lt.u32.totalorder %s1580_s29, %s1926_s13 }
  0x68   : > { %p1583_p12 = pnand %p1582_p9, %p1581_p7  ;;  %p1588_p4 = por %p1587_p2, %p1586_p1 }
  0x6a   : > { %p1584_p0 = pneg %p1583_p12  ;;  %p1590_p13 = por %p1589_p8, %p1588_p4 }
  0x6c   : > { %p1591_p6 = pnand %p1590_p13, %p1584_p0 }
  0x6e   : > { %1594 = shalt.err (!%p1591_p6)
}
  0x6f   : > { %s1595_s23 = scalar_lea.vmem %s1932_s16, 128  ;;  %s1725_s8 = smov [#allocation2]  }
  0x70   : > { %p1596_p10 = scmp.ne.s32.totalorder %s1932_s16, %s1595_s23  ;;  %s1600_s10 = sshll.u32 %s1725_s8, 4  ;;  %s1601_s10 = int_to_ptr.vmem [resolvable:$false] %s1600_s10 }
  0x71   : > { %s1602_s12 = scalar_lea.vmem %s1601_s10, 256  ;;  %p1603_p12 = scmp.lt.s32.totalorder %s1932_s16, %s1601_s10 }
  0x72   : > { %p1598_p3 = pnand %p1596_p10, %p1582_p9  ;;  %p1604_p1 = scmp.lt.s32.totalorder %s1602_s12, %s1595_s23 }
  0x74   : > { %p1599_p7 = pneg %p1598_p3  ;;  %p1605_p2 = por %p1604_p1, %p1603_p12 }
  0x76   : > { %p1606_p4 = pnand %p1605_p2, %p1599_p7 }
  0x78   : > { %1609 = shalt.err (!%p1606_p4)
}
  0x79   : > { %1402 = dma.hbm_to_vmem [thread:$0]  (!%p1928_p11), %s1926_s13, 128, %s1932_s16, %s222_s17  }
  0x7a   : > { %s243_s29 = scalar_lea.vmem [#allocation5], %s1288_s28  ;;  %s239_s15 = sand.u32 1, %s1718_s21  }
  0x7b   : > { %s250_s11 = sshll.u32 %s243_s29, 4  ;;  %s1314_s8 = sshll.u32 %s1718_s21, 10  ;;  %s1964_s11 = int_to_ptr.vmem [resolvable:$true] %s250_s11 }
  0x7c   : > { %s1970_s12 = scalar_lea.hbm %s2280_s1, %s1314_s8  ;;  %s1972_s27 = scalar_lea.sflag [#allocation6], %s239_s15 }
  0x7d   : > { %s1610_s0 = scalar_lea.hbm %s1970_s12, 1024  ;;  %s1615_s16 = scalar_lea.hbm %s2280_s1, 2048 }
  0x7e   : > { %p1611_p0 = scmp.ne.s32.totalorder %s1970_s12, %s1610_s0  ;;  %p1616_p6 = scmp.lt.u32.totalorder %s1970_s12, %s2280_s1 }
  0x7f   : > { %p1617_p10 = scmp.lt.u32.totalorder %s1615_s16, %s1610_s0  ;;  %p1619_p7 = scmp.lt.u32.totalorder %s1610_s0, %s1970_s12 }
  0x80   : > { %p1613_p8 = pnand %p1611_p0, %p1582_p9 }
  0x81   : > { %p1618_p3 = por %p1617_p10, %p1616_p6 }
  0x82   : > { %p1614_p13 = pneg %p1613_p8 }
  0x83   : > { %p1620_p12 = por %p1619_p7, %p1618_p3 }
  0x85   : > { %p1621_p1 = pnand %p1620_p12, %p1614_p13 }
  0x87   : > { %1624 = shalt.err (!%p1621_p1)
}
  0x88   : > { %s1625_s29 = scalar_lea.vmem %s1964_s11, 1024  ;;  %s1726_s15 = smov [#allocation5]  }
  0x89   : > { %p1626_p2 = scmp.ne.s32.totalorder %s1964_s11, %s1625_s29  ;;  %s1630_s8 = sshll.u32 %s1726_s15, 4  ;;  %s1631_s8 = int_to_ptr.vmem [resolvable:$false] %s1630_s8 }
  0x8a   : > { %s1632_s23 = scalar_lea.vmem %s1631_s8, 2048  ;;  %p1633_p8 = scmp.lt.s32.totalorder %s1964_s11, %s1631_s8 }
  0x8b   : > { %p1628_p4 = pnand %p1626_p2, %p1582_p9  ;;  %p1634_p6 = scmp.lt.s32.totalorder %s1632_s23, %s1625_s29 }
  0x8d   : > { %p1629_p0 = pneg %p1628_p4  ;;  %p1635_p10 = por %p1634_p6, %p1633_p8 }
  0x8f   : > { %p1636_p3 = pnand %p1635_p10, %p1629_p0 }
  0x91   : > { %1639 = shalt.err (!%p1636_p3)
}
  0x92   : > { %s2300_s0 = smov 8   ;;  %s2301_s10 = smov 128  }
  0x93   : > { %1405 = dma.hbm_to_vmem [thread:$0]  (!%p1928_p11), %s1970_s12, 1024, %s1964_s11, %s1972_s27, %s2301_s10, %s2301_s10, %s2300_s0  }
  0x94   : > { %p2302_p9 = scmp.ne.s32.totalorder %s2293_s26, 0 }
  0x95   : > { %s2004_s9 = sand.u32 (!%p2302_p9), 1, %s1710_s19   ;;  %p2303_p13 = scmp.ne.s32.totalorder (!%p2302_p9), %s2291_s24, 0 }
  0x96   : > { %262 = sbr.rel (%p2302_p9) target bundleno = 1224 (0x4c8), region = 40  ;;  %s1292_s13 = sshll.u32 (!%p2302_p9), %s2004_s9, 3 }
  0x97   : > { %s265_s16 = scalar_lea.sflag (!%p2302_p9), [#allocation3], %s2004_s9  ;;  %s2010_s6 = scalar_lea.vmem (!%p2302_p9), [#allocation2], %s1292_s13 }
  0x9d   : > { %1685 = dma.done.wait (%p2303_p13), %s265_s16, 128  }
  0x9e   : > { %1687 = vsyncadd (%p2303_p13), %s265_s16, 4294967168  ;;  %s273_s26 = sand.u32 1, %s1784_s22   ;;  %s1293_s27 = sshll.u32 %s2004_s9, 6 }
  0x9f   : > { %s274_s11 = scalar_lea.sflag [#allocation6], %s273_s26  ;;  %s2018_s12 = scalar_lea.vmem [#allocation5], %s1293_s27 }
  0xa0   : > { %1689 = dma.done.wait (%p2303_p13), %s274_s11, 1024  }
  0xa1   : > { %1691 = vsyncadd (%p2303_p13), %s274_s11, 4294966272  ;;  %p2304_p11 = scmp.eq.s32.totalorder %s1784_s22, 0 }
  0xa3   : > { %1693 = dma.done.wait (%p2304_p11), [#allocation6], 512   ;;  %p2305_p7 = pmov %p2304_p11 }
  0xa5   : > { %1695 = vsyncadd (%p2305_p7), [#allocation6], 4294966784  ;;  %p2306_p12 = pmov %p2305_p7 }
  0xa6   : > { %p2307_p1 = pmov %p2305_p7 }
  0xa7   : > { %1697 = dma.done.wait (%p2306_p12), [#allocation9], 320  }
  0xa8   : > { %1699 = vsyncadd (%p2307_p1), [#allocation9], 4294966976  ;;  %v1727_v0 = vmov 0.0|0.0   ;;  %vm1728_vm0 = vmmov 0   ;;  %v1729_v1 = vmov 0.0   ;;  %v335_v2 = vld [vmem:[#allocation7] sm:$0xff]  ;;  %v558_v23 = vlaneseq }
  0xa9   : > { %1357 = vmatprep.subr.bf16.mxu0 %v1727_v0  ;;  %1338 = vmatprep.mubr.msk.f32.mxu0 %vm1728_vm0, %v1729_v1  ;;  %v336_v3 = vld [vmem:[#allocation7 + $0x8] sm:$0xff]  ;;  %v337_v4 = vld [vmem:[#allocation7 + $0x10] sm:$0xff]  ;;  %vm423_vm1 = vcmask 130048   ;;  %v338_v6 = vld [vmem:[#allocation7 + $0x18] sm:$0xff]  ;;  %vm343_vm2 = vcmask 261120   ;;  %vm741_vm3 = vcmask 1041409  }
  0xaa   : > { %v1358_v5 = vpack.c.bf16 %v336_v3, %v335_v2  ;;  %v417_v7 = vld [vmem:[#allocation8] sm:$0xff]  ;;  %v418_v8 = vld [vmem:[#allocation8 + $0x8] sm:$0xff]  ;;  %v2033_v10 = vld [vmem:[%s2018_s12 + $0x10] sm:$0xff]  ;;  %v1361_v11 = vpack.c.bf16 %v338_v6, %v337_v4  ;;  %v1730_v21 = vmov 1966171168   ;;  %v2074_v25 = vshrl.u32 %v558_v23, 7 }
  0xab   : > { %v1363_v9 = vpack.c.bf16 %v418_v8, %v417_v7  ;;  %1348 = vmatprep.mubr.msk.f32.mxu1 %vm423_vm1, %v2033_v10  ;;  %v2038_v12 = vld [vmem:[%s2018_s12 + $0x18] sm:$0xff]  ;;  %v2041_v13 = vld [vmem:[%s2018_s12 + $0x20] sm:$0xff]  ;;  %v2052_v16 = vld [vmem:[%s2018_s12 + $0x28] sm:$0xff]  ;;  %v556_v22 = vunpack.c.l.s4 %v1730_v21  ;;  %vm743_vm4 = vcmask 1042434   ;;  %vm745_vm5 = vcmask 1043459   ;;  %s1311_s28 = sshll.u32 %s1784_s22, 7 }
  0xac   : > { %1359 = vmatpush3.bf16.msra.mxu0 %v1358_v5  ;;  %v322_v14 = vld [vmem:[%s2010_s6] sm:$0xff]  ;;  %v2047_v15 = vld [vmem:[%s2018_s12] sm:$0xff]  ;;  %v2060_v18 = vld [vmem:[%s2018_s12 + $0x8] sm:$0xff]  ;;  %v2078_v37 = vsub.s32 0, %v2074_v25  ;;  %vm747_vm6 = vcmask 1044484   ;;  %vm749_vm7 = vcmask 1045509   ;;  %s2235_s23 = scalar_lea.hbm %s2284_s5, %s1311_s28 }
  0xad   : > { %1360 = vmatprep.subr.bf16.mxu0 %v1727_v0  ;;  %1367 = vmatprep.subr.bf16.mxu1 %v1363_v9  ;;  %v2055_v17 = vld [vmem:[%s2018_s12 + $0x30] sm:$0xff]  ;;  %v2067_v19 = vld [vmem:[%s2018_s12 + $0x38] sm:$0xff]  ;;  %v557_v24 = vunpack.c.0.s8 %v556_v22  ;;  %vm751_vm8 = vcmask 1046534   ;;  %vm753_vm9 = vcmask 1047559   ;;  %vm756_vm10 = vcmask 64512   ;;  %s320_s17 = scalar_lea.vmem [#allocation11], %s1292_s13 }
  0xae   : > { %1368 = vmatpush3.bf16.msra.mxu1 %v1363_v9  ;;  %v334_v20 = vld [vmem:[#allocation10 + $0x3] sm:$0x1]  ;;  %v1298_v26 = vld [vmem:[#allocation10] ss:$0 sm:$0xff]  ;;  %v1300_v36 = vld [vmem:[#allocation10 + $0x1] ss:$0 sm:$0xff] }
  0xaf   : > { %1369 = vpush %v334_v20  ;;  %v560_v28 = vsub.s32 %v557_v24, %v2074_v25  ;;  %v1309_v22 = vld [vmem:[#allocation10 + $0x2] ss:$0 sm:$0xff]  ;;  %s1159_s29 = sshll.u32 %s320_s17, 4  ;;  %vm1142_vm11 = vcmask 195584   ;;  %s1146_s22 = scalar_lea.sflag [#allocation4], %s2004_s9  ;;  %s2237_s29 = int_to_ptr.vmem [resolvable:$true] %s1159_s29 }
  0xb0   : > { %1362 = vmatpush3.bf16.msra.mxu0 %v1361_v11  ;;  %s1640_s0 = scalar_lea.vmem %s2237_s29, 128  ;;  %s1732_s10 = smov [#allocation11]  }
  0xb1   : > { %1364 = vmatprep.subr.bf16.mxu0 %v1363_v9  ;;  %1349 = vmatmul.mubr.msk.f32.vlgmr.msra.gmra.mrb[0].mxu1 %vm423_vm1, %v2038_v12  ;;  %p1641_p2 = scmp.ne.s32.totalorder %s2237_s29, %s1640_s0  ;;  %s1644_s13 = sshll.u32 %s1732_s10, 4  ;;  %s1645_s13 = int_to_ptr.vmem [resolvable:$false] %s1644_s13 }
  0xb2   : > { %1351 = vmatprep.mubr.msk.f32.mxu1 %vm423_vm1, %v2041_v13  ;;  %s1646_s16 = scalar_lea.vmem %s1645_s13, 256  ;;  %p1647_p8 = scmp.lt.s32.totalorder %s2237_s29, %s1645_s13 }
  0xb3   : > { %1339 = vmatmul.mubr.msk.f32.vlgmr.msra.gmra.mrb[0].mxu0 %vm343_vm2, %v322_v14  ;;  %p1642_p4 = pnand %p1641_p2, %p1914_p5  ;;  %p1648_p6 = scmp.lt.s32.totalorder %s1646_s16, %s1640_s0 }
  0xb4   : > { %1366 = vmatpush3.bf16.msra.mxu0 %v1363_v9  ;;  %1345 = vmatprep.mubr.msk.f32.mxu0 %vm423_vm1, %v2047_v15 }
  0xb5   : > { %1352 = vmatmul.mubr.msk.f32.gmra.mrb[2].mxu1 %vm423_vm1, %v2052_v16  ;;  %p1643_p0 = pneg %p1642_p4  ;;  %p1649_p10 = por %p1648_p6, %p1647_p8 }
  0xb6   : > { %1354 = vmatprep.mubr.msk.f32.mxu1 %vm423_vm1, %v2055_v17 }
  0xb7   : > { %1346 = vmatmul.mubr.msk.f32.vlgmr.msra.gmra.mrb[2].mxu0 %vm423_vm1, %v2060_v18  ;;  %p1650_p3 = pnand %p1649_p10, %p1643_p0 }
  0xb9   : > { %1355 = vmatmul.mubr.msk.f32.gmra.mrb[4].mxu1 %vm423_vm1, %v2067_v19 }
  0xe0   : > { %s1370_s24 = spop %1369 }
 0x184   : > { %v1350_v27 = vpop.f32.mrb[0].mxu1 }
 0x185   : > { %v524_v29 = vpop.f32.mrb[1].mxu1  ;;  %v530_v44 = vadd.f32 %v1350_v27, %v1300_v36 }
 0x186   : > { %v413_v30 = vpop.f32.mrb[0].mxu0  ;;  %v525_v46 = vadd.f32 %v1300_v36, %v524_v29 }
 0x187   : > { %v414_v31 = vadd.f32 %v1298_v26, %v413_v30  ;;  %v1340_v32 = vpop.f32.mrb[1].mxu0 }
 0x188   : > { %v1353_v33 = vpop.f32.mrb[2].mxu1 }
 0x189   : > { %v554_v34 = vcombine.high %v414_v31, %v414_v31  ;;  %v561_v35 = vrot.slane %v414_v31, %v560_v28  ;;  %v534_v38 = vpop.f32.mrb[3].mxu1  ;;  %v540_v47 = vadd.f32 %v1353_v33, %v1300_v36 }
 0x18a   : > { %v1347_v39 = vpop.f32.mrb[2].mxu0  ;;  %v535_v55 = vadd.f32 %v1300_v36, %v534_v38 }
 0x18b   : > { %v568_v40 = vrot.slane %v554_v34, %v560_v28  ;;  %v569_v41 = vcombine.high %v561_v35, %v561_v35  ;;  %v577_v42 = vrot.slane %v561_v35, %v560_v28  ;;  %v514_v43 = vpop.f32.mrb[3].mxu0  ;;  %v520_v54 = vadd.f32 %v1347_v39, %v1300_v36 }
 0x18c   : > { %v515_v45 = vadd.f32 %v1300_v36, %v514_v43  ;;  %v1356_v48 = vpop.f32.mrb[4].mxu1  ;;  %v689_v43 = vstv %s1370_s24 }
 0x18d   : > { %v570_v49 = vcombine.high %v568_v40, %v568_v40  ;;  %v591_v50 = vrot.slane %v569_v41, %v560_v28  ;;  %v606_v51 = vrot.slane %v577_v42, %v2078_v37  ;;  %v599_v52 = vcombine.high %v577_v42, %v577_v42  ;;  %v544_v53 = vpop.f32.mrb[5].mxu1 }
 0x18e   : > { %v584_v56 = vrot.slane %v568_v40, %v560_v28  ;;  %v550_v57 = vadd.f32 %v1356_v48, %v1300_v36  ;;  %v545_v0 = vadd.f32 %v1300_v36, %v544_v53  ;;  %v2089_v42 = vand.u32 127, %v558_v23 }
 0x18f   : > { %v610_v58 = vrot.slane %v591_v50, %v2078_v37  ;;  %v601_v59 = vcombine.high %v591_v50, %v591_v50  ;;  %v643_v60 = vadd.f32 %v606_v51, %v515_v45  ;;  %v614_v61 = vrot.slane %v599_v52, %v2078_v37 }
 0x190   : > { %v598_v62 = vrot.slane %v570_v49, %v560_v28  ;;  %v622_v63 = vrot.slane %v584_v56, %v2078_v37  ;;  %v600_v1 = vcombine.high %v584_v56, %v584_v56  ;;  %v2093_v45 = vsub.s32 %v2089_v42, %v2074_v25 }
 0x191   : > { %v644_v2 = vadd.f32 %v610_v58, %v520_v54  ;;  %v618_v3 = vrot.slane %v601_v59, %v2078_v37  ;;  %1462 = vtanh.f32 %v643_v60  ;;  %v645_v4 = vadd.f32 %v614_v61, %v525_v46 }
 0x192   : > { %v626_v5 = vrot.slane %v598_v62, %v2078_v37  ;;  %v647_v6 = vadd.f32 %v622_v63, %v535_v55  ;;  %v602_v7 = vcombine.high %v598_v62, %v598_v62  ;;  %v630_v8 = vrot.slane %v600_v1, %v2078_v37 }
 0x193   : > { %1464 = vtanh.f32 %v644_v2  ;;  %v646_v9 = vadd.f32 %v618_v3, %v530_v44 }
 0x194   : > { %1466 = vtanh.f32 %v645_v4  ;;  %v648_v11 = vadd.f32 %v626_v5, %v540_v47  ;;  %v634_v14 = vrot.slane %v602_v7, %v2078_v37  ;;  %v649_v20 = vadd.f32 %v630_v8, %v545_v0 }
 0x195   : > { %1468 = vtanh.f32 %v646_v9 }
 0x196   : > { %v650_v21 = vadd.f32 %v634_v14, %v550_v57  ;;  %1470 = vtanh.f32 %v647_v6 }
 0x197   : > { %1472 = vtanh.f32 %v648_v11 }
 0x198   : > { %1474 = vtanh.f32 %v649_v20  ;;  %v1731_v20 = vmov 0  }
 0x199   : > { %1476 = vtanh.f32 %v650_v21  ;;  %1461 = vset.pattern.permute.xlu0 %v1731_v20  ;;  %1460 = vset.pattern.permute.xlu1 %v1731_v20  ;;  %v767_v21 = vsub.s32 1, %v2074_v25 }
 0x19b   : > { %v1463_v24 = vpop.eup %1462 }
 0x19c   : > { %v663_v26 = vmul.f32 %v1463_v24, %v1309_v22  ;;  %v775_v24 = vsub.s32 3, %v2074_v25 }
 0x19d   : > { %v1465_v27 = vpop.eup %1464 }
 0x19e   : > { %v1467_v28 = vpop.eup %1466  ;;  %671 = vadd.xlane.f32.xlu0 %v663_v26  ;;  %v664_v31 = vmul.f32 %v1465_v27, %v1309_v22 }
 0x19f   : > { %v665_v29 = vmul.f32 %v1467_v28, %v1309_v22  ;;  %v1469_v30 = vpop.eup %1468 }
 0x1a0   : > { %v1471_v32 = vpop.eup %1470  ;;  %v666_v33 = vmul.f32 %v1469_v30, %v1309_v22  ;;  %v779_v30 = vsub.s32 4, %v2074_v25 }
 0x1a1   : > { %675 = vadd.xlane.f32.xlu1 %v665_v29  ;;  %v1473_v34 = vpop.eup %1472  ;;  %v667_v35 = vmul.f32 %v1471_v32, %v1309_v22 }
 0x1a2   : > { %673 = vadd.xlane.f32.xlu0 %v664_v31  ;;  %v1475_v36 = vpop.eup %1474  ;;  %v668_v38 = vmul.f32 %v1473_v34, %v1309_v22 }
 0x1a3   : > { %v1477_v39 = vpop.eup %1476  ;;  %v669_v40 = vmul.f32 %v1475_v36, %v1309_v22 }
 0x1a4   : > { %v670_v41 = vmul.f32 %v1477_v39, %v1309_v22  ;;  %v771_v22 = vsub.s32 2, %v2074_v25 }
 0x1a5   : > { %677 = vadd.xlane.f32.xlu1 %v666_v33 }
 0x1a6   : > { %679 = vadd.xlane.f32.xlu0 %v667_v35 }
 0x1a9   : > { %681 = vadd.xlane.f32.xlu1 %v668_v38  ;;  %v783_v38 = vsub.s32 5, %v2074_v25 }
 0x1aa   : > { %683 = vadd.xlane.f32.xlu0 %v669_v40 }
 0x1ad   : > { %685 = vadd.xlane.f32.xlu1 %v670_v41 }
 0x22b   : > { %v672_v44 = vpop.xlane.xlu0 %671 }
 0x22c   : > { %v691_v46 = vadd.f32 %v689_v43, %v672_v44 }
 0x22e   : > { %v676_v47 = vpop.xlane.xlu1 %675  ;;  %v712_v51 = vrot.slane %v691_v46, %v2093_v45 }
 0x22f   : > { %v693_v48 = vadd.f32 %v689_v43, %v676_v47  ;;  %v674_v49 = vpop.xlane.xlu0 %673 }
 0x230   : > { %v692_v50 = vadd.f32 %v689_v43, %v674_v49 }
 0x231   : > { %v720_v23 = vrot.slane %v693_v48, %v2093_v45 }
 0x232   : > { %v716_v52 = vrot.slane %v692_v50, %v2093_v45  ;;  %v678_v53 = vpop.xlane.xlu1 %677 }
 0x233   : > { %v694_v54 = vadd.f32 %v689_v43, %v678_v53  ;;  %v680_v55 = vpop.xlane.xlu0 %679 }
 0x234   : > { %v742_v56 = vsel %vm741_vm3, %v716_v52, %v712_v51  ;;  %v695_v57 = vadd.f32 %v689_v43, %v680_v55 }
 0x235   : > { %v724_v58 = vrot.slane %v694_v54, %v2093_v45  ;;  %v744_v59 = vsel %vm743_vm4, %v720_v23, %v742_v56 }
 0x236   : > { %v728_v60 = vrot.slane %v695_v57, %v2093_v45  ;;  %v682_v61 = vpop.xlane.xlu1 %681 }
 0x237   : > { %v746_v62 = vsel %vm745_vm5, %v724_v58, %v744_v59  ;;  %v696_v63 = vadd.f32 %v689_v43, %v682_v61  ;;  %v684_v0 = vpop.xlane.xlu0 %683 }
 0x238   : > { %v748_v1 = vsel %vm747_vm6, %v728_v60, %v746_v62  ;;  %v697_v2 = vadd.f32 %v689_v43, %v684_v0 }
 0x239   : > { %v732_v3 = vrot.slane %v696_v63, %v2093_v45 }
 0x23a   : > { %v736_v4 = vrot.slane %v697_v2, %v2093_v45  ;;  %v686_v5 = vpop.xlane.xlu1 %685 }
 0x23b   : > { %v698_v6 = vadd.f32 %v689_v43, %v686_v5  ;;  %v750_v7 = vsel %vm749_vm7, %v732_v3, %v748_v1  ;;  %v787_v43 = vsub.s32 6, %v2074_v25 }
 0x23c   : > { %v752_v8 = vsel %vm751_vm8, %v736_v4, %v750_v7 }
 0x23d   : > { %v740_v9 = vrot.slane %v698_v6, %v2093_v45 }
 0x23f   : > { %v754_v11 = vsel %vm753_vm9, %v740_v9, %v752_v8 }
 0x240   : > { %v757_v14 = vsel %vm756_vm10, %v754_v11, -inf }
 0x241   : > { %758 = vmax.xlane.f32.xlu0 %v757_v14 }
 0x2ce   : > { %v759_v26 = vpop.xlane.xlu0 %758 }
 0x2cf   : > { %v764_v27 = vrot.slane %v759_v26, %v2078_v37  ;;  %v768_v28 = vrot.slane %v759_v26, %v767_v21  ;;  %v772_v29 = vrot.slane %v759_v26, %v771_v22  ;;  %v776_v31 = vrot.slane %v759_v26, %v775_v24 }
 0x2d0   : > { %v780_v39 = vrot.slane %v759_v26, %v779_v30  ;;  %v784_v44 = vrot.slane %v759_v26, %v783_v38  ;;  %v788_v49 = vrot.slane %v759_v26, %v787_v43 }
 0x2d1   : > { %v801_v32 = vsub.f32 %v691_v46, %v764_v27  ;;  %v802_v33 = vsub.f32 %v692_v50, %v768_v28  ;;  %v803_v34 = vsub.f32 %v693_v48, %v772_v29  ;;  %v804_v40 = vsub.f32 %v694_v54, %v776_v31 }
 0x2d2   : > { %v805_v47 = vsub.f32 %v695_v57, %v780_v39  ;;  %v791_v48 = vsub.s32 7, %v2074_v25  ;;  %v806_v50 = vsub.f32 %v696_v63, %v784_v44  ;;  %v807_v54 = vsub.f32 %v697_v2, %v788_v49 }
 0x2d3   : > { %v809_v35 = vmul.f32 1.442695, %v801_v32  ;;  %v811_v36 = vmul.f32 1.442695, %v802_v33  ;;  %v813_v41 = vmul.f32 1.442695, %v803_v34 }
 0x2d4   : > { %v815_v46 = vmul.f32 1.442695, %v804_v40  ;;  %v817_v51 = vmul.f32 1.442695, %v805_v47  ;;  %v792_v23 = vrot.slane %v759_v26, %v791_v48  ;;  %v819_v55 = vmul.f32 1.442695, %v806_v50 }
 0x2d5   : > { %1478 = vpow2.f32 %v809_v35  ;;  %v821_v58 = vmul.f32 1.442695, %v807_v54 }
 0x2d6   : > { %1480 = vpow2.f32 %v811_v36  ;;  %v808_v57 = vsub.f32 %v698_v6, %v792_v23 }
 0x2d7   : > { %1482 = vpow2.f32 %v813_v41 }
 0x2d8   : > { %1484 = vpow2.f32 %v815_v46  ;;  %v823_v60 = vmul.f32 1.442695, %v808_v57 }
 0x2d9   : > { %1486 = vpow2.f32 %v817_v51 }
 0x2da   : > { %1488 = vpow2.f32 %v819_v55 }
 0x2db   : > { %1490 = vpow2.f32 %v821_v58 }
 0x2dc   : > { %1492 = vpow2.f32 %v823_v60 }
 0x2df   : > { %v2131_v52 = vpop.eup %1478 }
 0x2e0   : > { %v2133_v53 = vpop.eup %1480  ;;  %834 = vperm.xlu1 %1460, %v2131_v52  }
 0x2e1   : > { %837 = vperm.xlu0 %1461, %v2133_v53   ;;  %v2139_v56 = vpop.eup %1482 }
 0x2e2   : > { %v2142_v59 = vpop.eup %1484 }
 0x2e3   : > { %v2145_v61 = vpop.eup %1486 }
 0x2e4   : > { %840 = vperm.xlu1 %1460, %v2139_v56   ;;  %v2148_v62 = vpop.eup %1488 }
 0x2e5   : > { %v2151_v63 = vpop.eup %1490 }
 0x2e6   : > { %v2154_v0 = vpop.eup %1492 }
 0x2e8   : > { %843 = vperm.xlu1 %1460, %v2142_v59  }
 0x2ec   : > { %846 = vperm.xlu1 %1460, %v2145_v61  }
 0x2f0   : > { %849 = vperm.xlu1 %1460, %v2148_v62  }
 0x2f4   : > { %852 = vperm.xlu1 %1460, %v2151_v63  }
 0x2f8   : > { %855 = vperm.xlu1 %1460, %v2154_v0  }
 0x35f   : > { %v835_v1 = vpop.permute.xlu1 %834 }
 0x360   : > { %v838_v5 = vpop.permute.xlu0 %837  ;;  %v860_v8 = vrot.slane %v835_v1, %v2093_v45  ;;  %v958_v44 = vmul.f32 %v835_v1, %v2047_v15 }
 0x361   : > { %v864_v7 = vrot.slane %v838_v5, %v2093_v45  ;;  %v959_v41 = vmul.f32 %v838_v5, %v2060_v18 }
 0x362   : > { %v966_v23 = vsel %vm423_vm1, %v958_v44, 0.0 }
 0x363   : > { %v841_v2 = vpop.permute.xlu1 %840  ;;  %v889_v26 = vsel %vm741_vm3, %v864_v7, %v860_v8  ;;  %v973_v51 = vsel %vm423_vm1, %v959_v41, 0.0 }
 0x364   : > { %v868_v9 = vrot.slane %v841_v2, %v2093_v45  ;;  %v960_v47 = vmul.f32 %v841_v2, %v2033_v10  ;;  %v974_v55 = vrot.slane %v973_v51, 4 }
 0x366   : > { %v890_v28 = vsel %vm743_vm4, %v868_v9, %v889_v26  ;;  %v980_v54 = vsel %vm423_vm1, %v960_v47, 0.0 }
 0x367   : > { %v844_v3 = vpop.permute.xlu1 %843  ;;  %v981_v57 = vrot.slane %v980_v54, 4 }
 0x368   : > { %v872_v11 = vrot.slane %v844_v3, %v2093_v45  ;;  %v961_v46 = vmul.f32 %v844_v3, %v2038_v12  ;;  %v975_v3 = vadd.f32 %v974_v55, %v973_v51 }
 0x369   : > { %v982_v5 = vadd.f32 %v981_v57, %v980_v54 }
 0x36a   : > { %v891_v31 = vsel %vm745_vm5, %v872_v11, %v890_v28  ;;  %v987_v18 = vsel %vm423_vm1, %v961_v46, 0.0 }
 0x36b   : > { %v847_v4 = vpop.permute.xlu1 %846  ;;  %v983_v26 = vrot.slane %v982_v5, 2 }
 0x36c   : > { %v876_v14 = vrot.slane %v847_v4, %v2093_v45  ;;  %v962_v49 = vmul.f32 %v847_v4, %v2041_v13 }
 0x36e   : > { %v892_v32 = vsel %vm747_vm6, %v876_v14, %v891_v31  ;;  %v994_v15 = vsel %vm423_vm1, %v962_v49, 0.0 }
 0x36f   : > { %v850_v6 = vpop.permute.xlu1 %849  ;;  %v995_v58 = vrot.slane %v994_v15, 4 }
 0x370   : > { %v880_v27 = vrot.slane %v850_v6, %v2093_v45 }
 0x371   : > { %v996_v7 = vadd.f32 %v995_v58, %v994_v15 }
 0x372   : > { %v893_v35 = vsel %vm749_vm7, %v880_v27, %v892_v32 }
 0x373   : > { %v853_v20 = vpop.permute.xlu1 %852  ;;  %v997_v28 = vrot.slane %v996_v7, 2 }
 0x374   : > { %v884_v29 = vrot.slane %v853_v20, %v2093_v45  ;;  %v964_v50 = vmul.f32 %v853_v20, %v2055_v17  ;;  %v988_v17 = vrot.slane %v987_v18, 4  ;;  %v976_v20 = vrot.slane %v975_v3, 2 }
 0x376   : > { %v894_v36 = vsel %vm751_vm8, %v884_v29, %v893_v35  ;;  %v1008_v12 = vsel %vm423_vm1, %v964_v50, 0.0  ;;  %v984_v35 = vadd.f32 %v983_v26, %v982_v5 }
 0x377   : > { %v856_v33 = vpop.permute.xlu1 %855  ;;  %v1009_v1 = vrot.slane %v1008_v12, 4 }
 0x378   : > { %v888_v34 = vrot.slane %v856_v33, %v2093_v45  ;;  %v963_v45 = vmul.f32 %v850_v6, %v2052_v16  ;;  %v965_v13 = vmul.f32 %v856_v33, %v2067_v19  ;;  %v967_v16 = vrot.slane %v966_v23, 4 }
 0x379   : > { %v989_v6 = vadd.f32 %v988_v17, %v987_v18  ;;  %v1010_v9 = vadd.f32 %v1009_v1, %v1008_v12  ;;  %v977_v33 = vadd.f32 %v976_v20, %v975_v3  ;;  %v985_v49 = vrot.slane %v984_v35, 1 }
 0x37a   : > { %v895_v39 = vsel %vm753_vm9, %v888_v34, %v894_v36  ;;  %v1001_v10 = vsel %vm423_vm1, %v963_v45, 0.0  ;;  %v1015_v2 = vsel %vm423_vm1, %v965_v13, 0.0  ;;  %v968_v4 = vadd.f32 %v967_v16, %v966_v23 }
 0x37b   : > { %v897_v40 = vsel %vm756_vm10, %v895_v39, 0.0  ;;  %v1002_v60 = vrot.slane %v1001_v10, 4  ;;  %v1016_v11 = vrot.slane %v1015_v2, 4  ;;  %v990_v27 = vrot.slane %v989_v6, 2 }
 0x37c   : > { %898 = vadd.xlane.f32.xlu1 %v897_v40  ;;  %v969_v19 = vrot.slane %v968_v4, 2  ;;  %v1011_v31 = vrot.slane %v1010_v9, 2  ;;  %v998_v39 = vadd.f32 %v997_v28, %v996_v7  ;;  %v978_v47 = vrot.slane %v977_v33, 1 }
 0x37d   : > { %v1003_v8 = vadd.f32 %v1002_v60, %v1001_v10  ;;  %v1017_v32 = vadd.f32 %v1016_v11, %v1015_v2  ;;  %v991_v36 = vadd.f32 %v990_v27, %v989_v6  ;;  %v986_v55 = vadd.f32 %v985_v49, %v984_v35 }
 0x37e   : > { %v970_v34 = vadd.f32 %v969_v19, %v968_v4  ;;  %v1012_v41 = vadd.f32 %v1011_v31, %v1010_v9  ;;  %v999_v50 = vrot.slane %v998_v39, 1  ;;  %v979_v12 = vadd.f32 %v978_v47, %v977_v33 }
 0x37f   : > { %v1004_v29 = vrot.slane %v1003_v8, 2  ;;  %v1018_v44 = vrot.slane %v1017_v32, 2  ;;  %v992_v45 = vrot.slane %v991_v36, 1 }
 0x380   : > { %v971_v46 = vrot.slane %v970_v34, 1  ;;  %v1013_v54 = vrot.slane %v1012_v41, 1  ;;  %v1000_v57 = vadd.f32 %v999_v50, %v998_v39 }
 0x381   : > { %v1005_v40 = vadd.f32 %v1004_v29, %v1003_v8  ;;  %v1019_v18 = vadd.f32 %v1018_v44, %v1017_v32  ;;  %v993_v16 = vadd.f32 %v992_v45, %v991_v36 }
 0x382   : > { %v972_v13 = vadd.f32 %v971_v46, %v970_v34  ;;  %v1014_v60 = vadd.f32 %v1013_v54, %v1012_v41 }
 0x383   : > { %v1006_v51 = vrot.slane %v1005_v40, 1  ;;  %v1020_v1 = vrot.slane %v1019_v18, 1 }
 0x385   : > { %v1007_v17 = vadd.f32 %v1006_v51, %v1005_v40  ;;  %v1021_v27 = vadd.f32 %v1020_v1, %v1019_v18 }
 0x409   : > { %v899_v14 = vpop.xlane.xlu1 %898 }
 0x40a   : > { %1494 = vrcp.f32 %v899_v14 }
 0x414   : > { %v1495_v23 = vpop.eup %1494 }
 0x415   : > { %v905_v15 = vrot.slane %v1495_v23, %v2078_v37  ;;  %v909_v10 = vrot.slane %v1495_v23, %v767_v21  ;;  %v913_v3 = vrot.slane %v1495_v23, %v771_v22  ;;  %v1022_v37 = vrot.slane %v1495_v23, 1 }
 0x416   : > { %v1023_v4 = vrot.slane %v1495_v23, 2  ;;  %v1024_v5 = vrot.slane %v1495_v23, 3  ;;  %v1025_v21 = vrot.slane %v1495_v23, 4  ;;  %v1026_v6 = vrot.slane %v1495_v23, 5 }
 0x417   : > { %v942_v58 = vmul.f32 %v2131_v52, %v905_v15  ;;  %v943_v2 = vmul.f32 %v2133_v53, %v909_v10  ;;  %v1027_v7 = vrot.slane %v1495_v23, 6  ;;  %v1028_v8 = vrot.slane %v1495_v23, 7 }
 0x418   : > { %v1037_v9 = vmul.f32 %v1495_v23, %v972_v13  ;;  %v1038_v11 = vmul.f32 %v1022_v37, %v979_v12  ;;  %v1039_v14 = vmul.f32 %v1023_v4, %v986_v55  ;;  %v1040_v20 = vmul.f32 %v1024_v5, %v993_v16 }
 0x419   : > { %1077 = vperm.xlu0 %1461, %v942_v58   ;;  %v1041_v52 = vmul.f32 %v1025_v21, %v1000_v57  ;;  %v1042_v19 = vmul.f32 %v1026_v6, %v1007_v17  ;;  %v1043_v26 = vmul.f32 %v1027_v7, %v1014_v60  ;;  %v917_v22 = vrot.slane %v1495_v23, %v775_v24 }
 0x41a   : > { %v1053_v53 = vrot.slane %v1038_v11, 7  ;;  %v1055_v28 = vrot.slane %v1039_v14, 6  ;;  %v944_v29 = vmul.f32 %v2139_v56, %v913_v3  ;;  %v1044_v31 = vmul.f32 %v1028_v8, %v1021_v27 }
 0x41b   : > { %v1057_v33 = vrot.slane %v1040_v20, 5  ;;  %v1059_v35 = vrot.slane %v1041_v52, 4  ;;  %v1061_v39 = vrot.slane %v1042_v19, 3  ;;  %v1063_v41 = vrot.slane %v1043_v26, 2 }
 0x41c   : > { %v1054_v32 = vsel %vm741_vm3, %v1053_v53, %v1037_v9  ;;  %v945_v44 = vmul.f32 %v2142_v59, %v917_v22  ;;  %v921_v24 = vrot.slane %v1495_v23, %v779_v30  ;;  %v1065_v47 = vrot.slane %v1044_v31, 1 }
 0x41d   : > { %1080 = vperm.xlu0 %1461, %v943_v2   ;;  %v1056_v34 = vsel %vm743_vm4, %v1055_v28, %v1054_v32  ;;  %v925_v50 = vrot.slane %v1495_v23, %v783_v38  ;;  %v929_v59 = vrot.slane %v1495_v23, %v787_v43  ;;  %v933_v54 = vrot.slane %v1495_v23, %v791_v48 }
 0x41e   : > { %v1058_v36 = vsel %vm745_vm5, %v1057_v33, %v1056_v34  ;;  %v946_v45 = vmul.f32 %v2145_v61, %v921_v24  ;;  %v1100_v12 = vadd.s32 4294967280, %v2089_v42 }
 0x41f   : > { %v1060_v40 = vsel %vm747_vm6, %v1059_v35, %v1058_v36  ;;  %v947_v51 = vmul.f32 %v2148_v62, %v925_v50  ;;  %v948_v30 = vmul.f32 %v2151_v63, %v929_v59  ;;  %v949_v18 = vmul.f32 %v2154_v0, %v933_v54 }
 0x420   : > { %v1062_v56 = vsel %vm749_vm7, %v1061_v39, %v1060_v40  ;;  %v1103_v13 = vsub.s32 %v1100_v12, %v2074_v25 }
 0x421   : > { %1083 = vperm.xlu0 %1461, %v944_v29   ;;  %v1064_v46 = vsel %vm751_vm8, %v1063_v41, %v1062_v56 }
 0x422   : > { %v1066_v49 = vsel %vm753_vm9, %v1065_v47, %v1064_v46 }
 0x425   : > { %1086 = vperm.xlu0 %1461, %v945_v44  }
 0x429   : > { %1089 = vperm.xlu0 %1461, %v946_v45  }
 0x42d   : > { %1092 = vperm.xlu0 %1461, %v947_v51  }
 0x431   : > { %1095 = vperm.xlu0 %1461, %v948_v30  }
 0x435   : > { %1098 = vperm.xlu0 %1461, %v949_v18  }
 0x498   : > { %v1078_v61 = vpop.permute.xlu0 %1077 }
 0x499   : > { %v1104_v16 = vrot.slane %v1078_v61, %v1103_v13 }
 0x49c   : > { %v1081_v15 = vpop.permute.xlu0 %1080 }
 0x49d   : > { %v1108_v55 = vrot.slane %v1081_v15, %v1103_v13 }
 0x49f   : > { %v1133_v0 = vsel %vm741_vm3, %v1108_v55, %v1104_v16 }
 0x4a0   : > { %v1084_v10 = vpop.permute.xlu0 %1083 }
 0x4a1   : > { %v1112_v63 = vrot.slane %v1084_v10, %v1103_v13 }
 0x4a3   : > { %v1134_v58 = vsel %vm743_vm4, %v1112_v63, %v1133_v0 }
 0x4a4   : > { %v1087_v38 = vpop.permute.xlu0 %1086 }
 0x4a5   : > { %v1116_v48 = vrot.slane %v1087_v38, %v1103_v13 }
 0x4a7   : > { %v1135_v42 = vsel %vm745_vm5, %v1116_v48, %v1134_v58 }
 0x4a8   : > { %v1090_v62 = vpop.permute.xlu0 %1089 }
 0x4a9   : > { %v1120_v23 = vrot.slane %v1090_v62, %v1103_v13 }
 0x4ab   : > { %v1136_v25 = vsel %vm747_vm6, %v1120_v23, %v1135_v42 }
 0x4ac   : > { %v1093_v43 = vpop.permute.xlu0 %1092 }
 0x4ad   : > { %v1124_v17 = vrot.slane %v1093_v43, %v1103_v13 }
 0x4af   : > { %v1137_v2 = vsel %vm749_vm7, %v1124_v17, %v1136_v25 }
 0x4b0   : > { %v1096_v57 = vpop.permute.xlu0 %1095 }
 0x4b1   : > { %v1128_v60 = vrot.slane %v1096_v57, %v1103_v13 }
 0x4b3   : > { %v1138_v37 = vsel %vm751_vm8, %v1128_v60, %v1137_v2 }
 0x4b4   : > { %v1099_v1 = vpop.permute.xlu0 %1098 }
 0x4b5   : > { %v1132_v3 = vrot.slane %v1099_v1, %v1103_v13 }
 0x4b7   : > { %v1139_v4 = vsel %vm753_vm9, %v1132_v3, %v1138_v37 }
 0x4b8   : > { %v1141_v5 = vsel %vm423_vm1, %v1066_v49, %v1139_v4 }
 0x4b9   : > { %v1143_v21 = vsel %vm1142_vm11, %v1141_v5, 0.0 }
 0x4ba   : > { %1144 = vst [vmem:[%s320_s17] sm:$0xff] %v1143_v21 }
 0x4bb   : > { %1653 = shalt.err (!%p1650_p3)
}
 0x4bc   : > { %s1654_s9 = scalar_lea.hbm %s2235_s23, 128  ;;  %s1658_s27 = scalar_lea.hbm %s2284_s5, 256 }
 0x4bd   : > { %p1655_p9 = scmp.ne.s32.totalorder %s2235_s23, %s1654_s9  ;;  %p1659_p7 = scmp.lt.u32.totalorder %s2235_s23, %s2284_s5 }
 0x4be   : > { %p1660_p12 = scmp.lt.u32.totalorder %s1658_s27, %s1654_s9  ;;  %p1662_p2 = scmp.lt.u32.totalorder %s1654_s9, %s2235_s23 }
 0x4bf   : > { %p1656_p13 = pnand %p1655_p9, %p1914_p5 }
 0x4c0   : > { %p1661_p1 = por %p1660_p12, %p1659_p7 }
 0x4c1   : > { %p1657_p11 = pneg %p1656_p13 }
 0x4c2   : > { %p1663_p4 = por %p1662_p2, %p1661_p1 }
 0x4c4   : > { %p1664_p0 = pnand %p1663_p4, %p1657_p11 }
 0x4c6   : > { %1667 = shalt.err (!%p1664_p0)
}
 0x4c7   : > { %1387 = dma.vmem_to_hbm [thread:$0]  (%p1914_p5), %s2237_s29, 128, %s2235_s23, %s1146_s22  }
 0x4c8 PF: > { %s1171_s24 = sand.u32 1, %s1706_s18   ;;  %p2308_p8 = scmp.ne.s32.totalorder %s2292_s25, 0 }
 0x4c9   : > { %p2309_p6 = scmp.ge.s32.totalorder %s1718_s21, 2  ;;  %s1172_s28 = scalar_lea.sflag [#allocation4], %s1171_s24 }
 0x4cb   : > { %p1407_p10 = pnand %p2309_p6, %p2308_p8 }
 0x4cd   : > { %1701 = dma.done.wait (!%p1407_p10), %s1172_s28, 128  }
 0x4ce   : > { %1703 = vsyncadd (!%p1407_p10), %s1172_s28, 4294967168  ;;  %p22_p3 = scmp.ge.s32.totalorder %s1900_s14, 4   ;;  %s2310_s18 = smov %s1710_s19 }
 0x4cf   : > { %s2311_s19 = smov %s1714_s20  ;;  %s2312_s20 = smov %s1910_s30 }
 0x4d0   : > { %s2313_s21 = smov %s1900_s14  ;;  %24 = sbr.rel (!%p22_p3) target bundleno = 10 (0xa), region = 110 }
 0x4d7   :  { %1177 = vsyncpa [#allocation3], 1 }
 0x4d8   :  { %1179 = vsyncpa [#allocation3 + $0x1], 1 }
 0x4d9   :  { %1180 = vsyncpa [#allocation6], 1 }
 0x4da   :  { %1182 = vsyncpa [#allocation6 + $0x1], 1 }
 0x4db   :  { %1183 = vsyncpa [#allocation9], 1 }
 0x4dc   :  { %1184 = vsyncpa [#allocation4], 1 }
 0x4dd   :  { %1186 = vsyncpa [#allocation4 + $0x1], 1 }

</bundles_post_ra>
